<compile_context>
chip_gen: v7x
topology: tpu7x:2x2x1
jax: 0.10.0
libtpu: 0.0.40
codegen_flags: <defaults>
</compile_context>

<pallas_src>
import functools

import jax
import jax.numpy as jnp
from jax import lax
from jax.experimental import pallas as pl
from jax.experimental.pallas import tpu as pltpu

ALPHA = 0.25
GAMMA = 2.0
EPS = 1e-6

LANES = 128
SUBLANES = 8
TARGET_BLOCK_BYTES = 4 << 20   # ~4 MiB per input block (per review, v6e/v7x)
MIN_GRID_BLOCKS = 4            # keep both v7x TensorCores busy when possible


def _round_up(x, m):
    return ((x + m - 1) // m) * m


def _sublane_mult(dtype):
    # Native sublane packing: f32 -> 8, bf16/f16 -> 16, int8/fp8 -> 32.
    return {1: 32, 2: 16, 4: 8}.get(jnp.dtype(dtype).itemsize, 8)


@functools.lru_cache(maxsize=1)
def _vmem_limit_bytes():
    cap = 64 * 1024 * 1024  # conservative default (v7x per-TC physical)
    try:
        info = pltpu.get_tpu_info()
        cap = int(getattr(info, "vmem_capacity_bytes", cap))
    except Exception:
        pass
    # Enough for 2 inputs x 2 pipeline buffers x 4 MiB blocks on every
    # generation (v5e's 16 MiB scoped default would OOM), while staying well
    # under v7x's 64 MiB physical VMEM.
    return int(min(48 * 1024 * 1024, max(24 * 1024 * 1024, cap - 16 * 1024 * 1024)))


def _focal_loss_kernel(pred_ref, targ_ref, out_ref, *, alpha, gamma,
                       rows_valid_last, mask_last, assume_binary_targets):
    # Cast per block inside VMEM; inputs stay in their native dtype on the wire.
    p = pred_ref[...].astype(jnp.float32)
    p = jnp.clip(p, EPS, 1.0 - EPS)
    one_m_p = 1.0 - p

    # gamma == 2 -> squares on the VPU (avoids exp/log-based pow on the EUP).
    if gamma == 2.0:
        p_g = p * p
        q_g = one_m_p * one_m_p
    else:
        p_g = p ** gamma
        q_g = one_m_p ** gamma

    t_raw = targ_ref[...]
    if assume_binary_targets:
        # Hard 0/1 labels: one log per element, selects instead of blends.
        if jnp.issubdtype(t_raw.dtype, jnp.integer):
            pos = t_raw > 0
        else:
            pos = t_raw > 0.5
        bce = -jnp.log(jnp.where(pos, p, one_m_p))
        focal_w = jnp.where(pos, q_g, p_g)
        alpha_w = jnp.where(pos, jnp.float32(alpha), jnp.float32(1.0 - alpha))
    else:
        t = t_raw.astype(jnp.float32)
        one_m_t = 1.0 - t
        bce = -t * jnp.log(p) - one_m_t * jnp.log(one_m_p)
        focal_w = t * q_g + one_m_t * p_g
        # FMA-friendly form of  t*alpha + (1-t)*(1-alpha)
        alpha_w = (1.0 - alpha) + t * (2.0 * alpha - 1.0)

    loss = focal_w * alpha_w * bce

    def _store(x):
        # Sublane-grouped partial sum with 4 independent accumulators:
        # (BR,128) -> (par, BR/(par*8), 8, 128) -> sum axis 1 -> sum axis 0.
        # Pure vreg adds; the single cross-lane reduce happens in the wrapper.
        rows = x.shape[0]
        par = 4
        while rows % (par * SUBLANES):
            par //= 2
        y = x.reshape(par, rows // (par * SUBLANES), SUBLANES, LANES)
        out_ref[0] = jnp.sum(jnp.sum(y, axis=1), axis=0)

    if mask_last:
        i = pl.program_id(0)
        last = pl.num_programs(0) - 1

        @pl.when(i == last)
        def _():
            # Last block extends past the array: OOB rows contain unspecified
            # data (never read from HBM OOB); mask them out before the sum.
            ridx = lax.broadcasted_iota(jnp.int32, loss.shape, 0)
            _store(jnp.where(ridx < rows_valid_last, loss, 0.0))

        @pl.when(i != last)
        def _():
            _store(loss)
    else:
        _store(loss)


def _focal_sum_aligned(p2d, t2d, alpha, gamma, assume_binary_targets):
    """Sum of per-element focal loss over a (rows, 128) slab via Pallas."""
    rows = int(p2d.shape[0])
    sub_mult = max(_sublane_mult(p2d.dtype), _sublane_mult(t2d.dtype))
    max_itemsize = max(jnp.dtype(p2d.dtype).itemsize, jnp.dtype(t2d.dtype).itemsize)
    max_block_rows = _round_up(TARGET_BLOCK_BYTES // (LANES * max_itemsize), sub_mult)

    # Keep >= MIN_GRID_BLOCKS blocks when possible (v7x megacore), otherwise
    # use the biggest block that fits the VMEM budget.
    block_rows = min(max_block_rows,
                     _round_up(pl.cdiv(rows, MIN_GRID_BLOCKS), sub_mult))
    block_rows = max(block_rows, sub_mult)
    num_blocks = pl.cdiv(rows, block_rows)
    rows_valid_last = rows - (num_blocks - 1) * block_rows
    mask_last = rows_valid_last != block_rows

    kernel = functools.partial(
        _focal_loss_kernel,
        alpha=float(alpha), gamma=float(gamma),
        rows_valid_last=int(rows_valid_last),
        mask_last=bool(mask_last),
        assume_binary_targets=bool(assume_binary_targets))

    partials = pl.pallas_call(
        kernel,
        out_shape=jax.ShapeDtypeStruct((num_blocks, SUBLANES, LANES),
                                       jnp.float32),
        grid_spec=pltpu.PrefetchScalarGridSpec(
            num_scalar_prefetch=0,
            grid=(num_blocks,),
            in_specs=[
                pl.BlockSpec((block_rows, LANES), lambda i: (i, 0)),
                pl.BlockSpec((block_rows, LANES), lambda i: (i, 0)),
            ],
            out_specs=pl.BlockSpec((1, SUBLANES, LANES),
                                   lambda i: (i, 0, 0)),
        ),
        compiler_params=pltpu.CompilerParams(
            dimension_semantics=("parallel",),
            vmem_limit_bytes=_vmem_limit_bytes()),
    )(p2d, t2d)

    # Tiny final reduce over per-block (8,128) partial sums.
    return jnp.sum(partials)


def _focal_sum_small(p, t, alpha, gamma, assume_binary_targets):
    """jnp fallback used only for the < 128-lane misaligned remainder."""
    p = jnp.clip(p.astype(jnp.float32), EPS, 1.0 - EPS)
    if assume_binary_targets:
        if jnp.issubdtype(t.dtype, jnp.integer) or t.dtype == jnp.bool_:
            t = (t > 0).astype(jnp.float32)
        else:
            t = (t > 0.5).astype(jnp.float32)
    else:
        t = t.astype(jnp.float32)
    bce = -t * jnp.log(p) - (1.0 - t) * jnp.log(1.0 - p)
    fw = t * (1.0 - p) ** gamma + (1.0 - t) * p ** gamma
    aw = t * alpha + (1.0 - t) * (1.0 - alpha)
    return jnp.sum(fw * aw * bce)


def focal_loss(pred, target, alpha=ALPHA, gamma=GAMMA,
               assume_binary_targets=None):
    """Pallas-backed FocalLoss.forward: returns the scalar mean focal loss.

    assume_binary_targets: None -> auto (True for integer/bool targets);
    True opt-in thresholds float targets at 0.5 (1 log/element fast path).
    """
    assert pred.shape == target.shape
    n = int(pred.size)
    if n == 0:
        return jnp.float32(float("nan"))   # torch .mean() of empty is NaN

    if assume_binary_targets is None:
        assume_binary_targets = bool(
            jnp.issubdtype(target.dtype, jnp.integer)
            or jnp.issubdtype(target.dtype, jnp.bool_))
    if jnp.issubdtype(target.dtype, jnp.bool_):
        target = target.astype(jnp.int8)   # keep a narrow integer on the wire

    pred_flat = pred.reshape(-1)
    targ_flat = target.reshape(-1)

    rows_aligned = n // LANES
    n_aligned = rows_aligned * LANES

    total = jnp.float32(0.0)
    if rows_aligned > 0:
        if n_aligned == n:
            # Zero-copy bitcast view; no padding, no astype, no concatenate.
            p2d = pred_flat.reshape(rows_aligned, LANES)
            t2d = targ_flat.reshape(rows_aligned, LANES)
        else:
            # TODO(synk): for lane-misaligned n this prefix slice still costs
            # one copy; a pl.ANY + manual-DMA variant would make it zero-copy.
            p2d = pred_flat[:n_aligned].reshape(rows_aligned, LANES)
            t2d = targ_flat[:n_aligned].reshape(rows_aligned, LANES)
        total = total + _focal_sum_aligned(p2d, t2d, alpha, gamma,
                                           assume_binary_targets)
    if n_aligned < n:
        # < 128 leftover elements: tiny jnp sum added before the mean.
        total = total + _focal_sum_small(pred_flat[n_aligned:],
                                         targ_flat[n_aligned:],
                                         alpha, gamma, assume_binary_targets)

    # Double-precision reciprocal of n (exact to f32 ulp even for huge n).
    return total * jnp.float32(1.0 / n)


def _focal_loss_ref(pred, target, alpha=ALPHA, gamma=GAMMA):
    p = jnp.clip(pred.astype(jnp.float32), EPS, 1.0 - EPS)
    t = target.astype(jnp.float32)
    bce = -t * jnp.log(p) - (1.0 - t) * jnp.log(1.0 - p)
    fw = t * (1.0 - p) ** gamma + (1.0 - t) * p ** gamma
    aw = t * alpha + (1.0 - t) * (1.0 - alpha)
    return jnp.mean(fw * aw * bce)


if __name__ == "__main__":
    key = jax.random.PRNGKey(0)
    k1, k2, k3, k4, k5 = jax.random.split(key, 5)

    # Primary case: NCHW probabilities + hard float targets (zero-copy path).
    pred = jax.random.uniform(k1, (2, 4, 16, 16), dtype=jnp.float32,
                              minval=0.0, maxval=1.0)
    target = (jax.random.uniform(k2, (2, 4, 16, 16)) > 0.5).astype(jnp.float32)
    loss = focal_loss(pred, target)
    jax.block_until_ready(loss)
    ref = _focal_loss_ref(pred, target)
    assert jnp.allclose(loss, ref, rtol=1e-5, atol=1e-6), (loss, ref)

    # Integer targets -> binary fast path auto-selected.
    target_i = (jax.random.uniform(k2, (2, 4, 16, 16)) > 0.5).astype(jnp.int32)
    loss_i = focal_loss(pred, target_i)
    jax.block_until_ready(loss_i)
    ref_i = _focal_loss_ref(pred, target_i.astype(jnp.float32))
    assert jnp.allclose(loss_i, ref_i, rtol=1e-5, atol=1e-6), (loss_i, ref_i)

    # bf16 inputs stay bf16 on the wire (16-sublane blocks, f32 math in VMEM).
    pred_b = jax.random.uniform(k3, (2, 8, 16, 16),
                                dtype=jnp.float32).astype(jnp.bfloat16)
    targ_b = jax.random.uniform(k4, (2, 8, 16, 16),
                                dtype=jnp.float32).astype(jnp.bfloat16)
    loss_b = focal_loss(pred_b, targ_b)
    jax.block_until_ready(loss_b)
    ref_b = _focal_loss_ref(pred_b.astype(jnp.float32),
                            targ_b.astype(jnp.float32))
    assert jnp.allclose(loss_b, ref_b, rtol=1e-4, atol=1e-5), (loss_b, ref_b)

    # Ragged case (3*5*7*11 = 1155 elems, soft targets): exercises the
    # in-kernel partial-last-block row mask + the <128-elem jnp remainder.
    pred_r = jax.random.uniform(k3, (3, 5, 7, 11), dtype=jnp.float32,
                                minval=0.0, maxval=1.0)
    targ_r = jax.random.uniform(k5, (3, 5, 7, 11), dtype=jnp.float32)
    loss_r = focal_loss(pred_r, targ_r)
    jax.block_until_ready(loss_r)
    ref_r = _focal_loss_ref(pred_r, targ_r)
    assert jnp.allclose(loss_r, ref_r, rtol=1e-5, atol=1e-6), (loss_r, ref_r)

    print("KERNEL_OK")
</pallas_src>

<mosaic_0001>
module attributes {stable_mosaic.version = 11 : i64} {
  func.func @_focal_loss_kernel(%arg0: i32, %arg1: memref<8x128xf32, #tpu.memory_space<vmem>>, %arg2: memref<8x128xf32, #tpu.memory_space<vmem>>, %arg3: memref<1x8x128xf32, #tpu.memory_space<vmem>>) attributes {dimension_semantics = [#tpu.dimension_semantics<parallel>], iteration_bounds = array<i64: 2>, scalar_prefetch = 0 : i64, scratch_operands = 0 : i64, tpu.core_type = #tpu.core_type<tc>, window_params = [{transform_indices = @transform_0, window_bounds = array<i64: 8, 128>}, {transform_indices = @transform_1, window_bounds = array<i64: 8, 128>}, {transform_indices = @transform_2, window_bounds = array<i64: 1, 8, 128>}]} {
    %c0 = arith.constant 0 : index
    %c0_0 = arith.constant 0 : index
    %0 = vector.load %arg1[%c0, %c0_0] : memref<8x128xf32, #tpu.memory_space<vmem>>, vector<8x128xf32>
    %cst = arith.constant 9.99999997E-7 : f32
    %cst_1 = arith.constant 0.999998986 : f32
    %1 = vector.broadcast %cst : f32 to vector<8x128xf32>
    %2 = arith.maximumf %1, %0 : vector<8x128xf32>
    %3 = vector.broadcast %cst_1 : f32 to vector<8x128xf32>
    %4 = arith.minimumf %3, %2 : vector<8x128xf32>
    %cst_2 = arith.constant 1.000000e+00 : f32
    %5 = vector.broadcast %cst_2 : f32 to vector<8x128xf32>
    %6 = arith.subf %5, %4 : vector<8x128xf32>
    %7 = arith.mulf %4, %4 : vector<8x128xf32>
    %8 = arith.mulf %6, %6 : vector<8x128xf32>
    %c0_3 = arith.constant 0 : index
    %c0_4 = arith.constant 0 : index
    %9 = vector.load %arg2[%c0_3, %c0_4] : memref<8x128xf32, #tpu.memory_space<vmem>>, vector<8x128xf32>
    %cst_5 = arith.constant 1.000000e+00 : f32
    %10 = vector.broadcast %cst_5 : f32 to vector<8x128xf32>
    %11 = arith.subf %10, %9 : vector<8x128xf32>
    %cst_6 = arith.constant 0.000000e+00 : f32
    %12 = vector.broadcast %cst_6 : f32 to vector<8x128xf32>
    %13 = arith.subf %12, %9 : vector<8x128xf32>
    %14 = math.log %4 : vector<8x128xf32>
    %15 = arith.mulf %13, %14 : vector<8x128xf32>
    %16 = math.log %6 : vector<8x128xf32>
    %17 = arith.mulf %11, %16 : vector<8x128xf32>
    %18 = arith.subf %15, %17 : vector<8x128xf32>
    %19 = arith.mulf %9, %8 : vector<8x128xf32>
    %20 = arith.mulf %11, %7 : vector<8x128xf32>
    %21 = arith.addf %19, %20 : vector<8x128xf32>
    %cst_7 = arith.constant -5.000000e-01 : f32
    %22 = vector.broadcast %cst_7 : f32 to vector<8x128xf32>
    %23 = arith.mulf %9, %22 : vector<8x128xf32>
    %cst_8 = arith.constant 7.500000e-01 : f32
    %24 = vector.broadcast %cst_8 : f32 to vector<8x128xf32>
    %25 = arith.addf %24, %23 : vector<8x128xf32>
    %26 = arith.mulf %21, %25 : vector<8x128xf32>
    %27 = arith.mulf %26, %18 : vector<8x128xf32>
    %28 = vector.shape_cast %27 : vector<8x128xf32> to vector<1x1x8x128xf32>
    %cst_9 = arith.constant dense<0.000000e+00> : vector<1x8x128xf32>
    %29 = vector.multi_reduction <add>, %28, %cst_9 [1] : vector<1x1x8x128xf32> to vector<1x8x128xf32>
    %cst_10 = arith.constant dense<0.000000e+00> : vector<8x128xf32>
    %30 = vector.multi_reduction <add>, %29, %cst_10 [0] : vector<1x8x128xf32> to vector<8x128xf32>
    %c0_11 = arith.constant 0 : index
    %c0_12 = arith.constant 0 : index
    %c0_13 = arith.constant 0 : index
    %31 = vector.load %arg3[%c0_11, %c0_12, %c0_13] : memref<1x8x128xf32, #tpu.memory_space<vmem>>, vector<1x8x128xf32>
    %32 = vector.shape_cast %31 : vector<1x8x128xf32> to vector<8x128xf32>
    %33 = vector.shape_cast %30 : vector<8x128xf32> to vector<1x8x128xf32>
    tpu.vector_store %arg3[%c0_11, %c0_12, %c0_13], %33 {strides = array<i32>} : memref<1x8x128xf32, #tpu.memory_space<vmem>>, vector<1x8x128xf32>,
    return
  }
  func.func @transform_0(%arg0: i32) -> (i32, i32) {
    %c0_i32 = arith.constant 0 : i32
    %c0_i32_0 = arith.constant 0 : i32
    return %arg0, %c0_i32 : i32, i32
  }
  func.func @transform_1(%arg0: i32) -> (i32, i32) {
    %c0_i32 = arith.constant 0 : i32
    %c0_i32_0 = arith.constant 0 : i32
    return %arg0, %c0_i32 : i32, i32
  }
  func.func @transform_2(%arg0: i32) -> (i32, i32, i32) {
    %c0_i32 = arith.constant 0 : i32
    %c0_i32_0 = arith.constant 0 : i32
    %c0_i32_1 = arith.constant 0 : i32
    return %arg0, %c0_i32, %c0_i32_0 : i32, i32, i32
  }
}

</mosaic_0001>

<bundles_post_ra>
// kernel: tpu_custom_call.1
= control target key start
LH: loop header
LB: loop body
LE: loop exit
PB: predicated region body
PF: predicated region fallthrough
CT: control target
= control target key end

     0   :  { %7 = vsyncpa [#allocation3], 0  ;;  %s763_s0 = inlined_call_operand.hbm [shape: f32[16,128], index: 0, kind: input, shape index: {}]   ;;  %s764_s1 = inlined_call_operand.hbm [shape: f32[16,128], index: 1, kind: input, shape index: {}]   ;;  %s765_s2 = inlined_call_operand.hbm [shape: f32[2,8,128], index: 2, kind: output, shape index: {}]  }
   0x1   :  { %9 = vsyncpa [#allocation3 + $0x1], 0 }
   0x2   :  { %10 = vsyncpa [#allocation6], 0 }
   0x3   :  { %12 = vsyncpa [#allocation6 + $0x1], 0 }
   0x4   :  { %13 = vsyncpa [#allocation4], 0 }
   0x5   :  { %15 = vsyncpa [#allocation4 + $0x1], 0  ;;  %s549_s9 = smov 0   ;;  %s551_s10 = smov 0  }
   0x6   :  { %s553_s11 = smov 0   ;;  %s555_s12 = smov 0  }
   0x7 LB: > { %s570_s13 = sadd.s32 4294967295, %s529_s12   ;;  %s329_s14 = sadd.s32 4294967294, %s529_s12   ;;  %s529_s12 = sphi %s555_s12, %s784_s12   ;;  %s525_s11 = sphi %s553_s11, %s783_s11   ;;  %s521_s10 = sphi %s551_s10, %s782_s10   ;;  %s517_s9 = sphi %s549_s9, %s781_s9  }
   0x8   : > { %s574_s15 = sadd.s32 1, %s529_s12   ;;  %s28_s16 = sadd.s32 1, %s525_s11 }
   0x9   : > { %s25_s17 = ssub.s32 %s529_s12, %s574_s15  ;;  %p35_p0 = scmp.ne.s32.totalorder %s525_s11, %s521_s10 }
   0xa   : > { %p26_p1 = scmp.eq.s32.totalorder %s25_s17, 0  ;;  %p36_p2 = scmp.eq.s32.totalorder %s529_s12, 0 }
   0xb   : > { %p41_p3 = scmp.ne.s32.totalorder %s521_s10, %s517_s9  ;;  %p42_p4 = scmp.eq.s32.totalorder %s570_s13, 0 }
   0xc   : > { %s586_s18 = scalar_select %p26_p1, %s525_s11, %s28_s16  }
   0xd   : > { %p588_p5 = por %p36_p2, %p35_p0  ;;  %p592_p6 = por %p42_p4, %p41_p3 }
   0xe   : > { %p91_p7 = scmp.eq.s32.totalorder %s570_s13, 1  ;;  %p97_p8 = scmp.eq.s32.totalorder %s329_s14, 1 }
   0xf   : > { %s769_s20 = scalar_select %p592_p6, 1, 0 }
  0x10   : > { %p361_p10 = scmp.lt.s32.totalorder %s529_s12, 2  ;;  %p599_p11 = por %p91_p7, %p35_p0 }
  0x11   : > { %p603_p12 = por %p97_p8, %p41_p3  ;;  %s608_s23 = sand.u32 1, %s525_s11  }
  0x12   : > { %s770_s21 = scalar_select %p599_p11, 1, 0 }
  0x13   : > { %s771_s22 = scalar_select %p603_p12, 1, 0 }
  0x14   : > { %s333_s24 = sshll.u32 %s529_s12, 7  ;;  %s332_s25 = sshll.u32 %s608_s23, 3 }
  0x15   : > { %s617_s28 = scalar_lea.hbm %s763_s0, %s333_s24  ;;  %s121_s29 = scalar_lea.vmem [#allocation2], %s332_s25 }
  0x16   : > { %s128_s30 = sshll.u32 %s121_s29, 4  ;;  %p623_p13 = pnand %p361_p10, %p588_p5  ;;  %s627_s30 = int_to_ptr.vmem [resolvable:$true] %s128_s30 }
  0x17   : > { %s118_s4 = scalar_lea.sflag [#allocation3], %s608_s23  ;;  %s399_s5 = scalar_lea.hbm %s617_s28, 128 }
  0x18   : > { %p400_p2 = scmp.ne.s32.totalorder %s617_s28, %s399_s5  ;;  %p401_p3 = pneg %p623_p13 }
  0x19   : > { %s404_s8 = scalar_lea.hbm %s763_s0, 256  ;;  %p405_p5 = scmp.lt.u32.totalorder %s617_s28, %s763_s0 }
  0x1a   : > { %p402_p4 = pnand %p401_p3, %p400_p2  ;;  %p406_p8 = scmp.lt.u32.totalorder %s404_s8, %s399_s5 }
  0x1b   : > { %p408_p9 = scmp.lt.u32.totalorder %s399_s5, %s617_s28 }
  0x1c   : > { %p403_p7 = pneg %p402_p4  ;;  %p407_p10 = por %p406_p8, %p405_p5 }
  0x1e   : > { %p409_p0 = por %p408_p9, %p407_p10 }
  0x20   : > { %p410_p1 = pnand %p409_p0, %p403_p7 }
  0x22   : > { %413 = shalt.err (!%p410_p1)
}
  0x23   : > { %s414_s17 = scalar_lea.vmem %s627_s30, 128  ;;  %s531_s19 = smov [#allocation2]  }
  0x24   : > { %p415_p2 = scmp.ne.s32.totalorder %s627_s30, %s414_s17  ;;  %s419_s26 = sshll.u32 %s531_s19, 4  ;;  %s420_s26 = int_to_ptr.vmem [resolvable:$false] %s419_s26 }
  0x25   : > { %s421_s27 = scalar_lea.vmem %s420_s26, 256  ;;  %p422_p11 = scmp.lt.s32.totalorder %s627_s30, %s420_s26 }
  0x26   : > { %p417_p4 = pnand %p415_p2, %p401_p3  ;;  %p423_p5 = scmp.lt.s32.totalorder %s421_s27, %s414_s17 }
  0x28   : > { %p418_p12 = pneg %p417_p4  ;;  %p424_p8 = por %p423_p5, %p422_p11 }
  0x2a   : > { %p425_p9 = pnand %p424_p8, %p418_p12 }
  0x2c   : > { %428 = shalt.err (!%p425_p9)
}
  0x2d   : > { %353 = dma.hbm_to_vmem [thread:$0]  (!%p623_p13), %s617_s28, 128, %s627_s30, %s118_s4  }
  0x2e   : > { %p773_p0 = scmp.lt.s32.totalorder %s529_s12, 3  ;;  %p774_p1 = scmp.ge.s32.totalorder %s529_s12, 1 }
  0x2f   : > { %s670_s7 = scalar_lea.hbm %s764_s1, %s333_s24  ;;  %s139_s8 = scalar_lea.vmem [#allocation5], %s332_s25 }
  0x30   : > { %p661_p7 = pnand %p774_p1, %p773_p0  ;;  %s146_s14 = sshll.u32 %s139_s8, 4  ;;  %s147_s14 = int_to_ptr.vmem [resolvable:$true] %s146_s14 }
  0x31   : > { %s136_s28 = scalar_lea.sflag [#allocation6], %s608_s23  ;;  %s429_s30 = scalar_lea.hbm %s670_s7, 128 }
  0x32   : > { %s775_s29 = scalar_select %p661_p7, 1, 0 }
  0x33   : > { %p430_p11 = scmp.ne.s32.totalorder %s670_s7, %s429_s30  ;;  %s434_s24 = scalar_lea.hbm %s764_s1, 256 }
  0x34   : > { %p435_p2 = scmp.lt.u32.totalorder %s670_s7, %s764_s1  ;;  %p436_p4 = scmp.lt.u32.totalorder %s434_s24, %s429_s30 }
  0x35   : > { %p432_p12 = pnand %p430_p11, %p401_p3  ;;  %p438_p8 = scmp.lt.u32.totalorder %s429_s30, %s670_s7 }
  0x36   : > { %p437_p5 = por %p436_p4, %p435_p2 }
  0x37   : > { %p433_p10 = pneg %p432_p12 }
  0x38   : > { %p439_p9 = por %p438_p8, %p437_p5 }
  0x3a   : > { %p440_p0 = pnand %p439_p9, %p433_p10 }
  0x3c   : > { %443 = shalt.err (!%p440_p0)
}
  0x3d   : > { %s444_s23 = scalar_lea.vmem %s147_s14, 128  ;;  %s532_s25 = smov [#allocation5]  }
  0x3e   : > { %p445_p1 = scmp.ne.s32.totalorder %s147_s14, %s444_s23  ;;  %s449_s26 = sshll.u32 %s532_s25, 4  ;;  %s450_s26 = int_to_ptr.vmem [resolvable:$false] %s449_s26 }
  0x3f   : > { %s451_s27 = scalar_lea.vmem %s450_s26, 256  ;;  %p452_p6 = scmp.lt.s32.totalorder %s147_s14, %s450_s26 }
  0x40   : > { %p447_p11 = pnand %p445_p1, %p401_p3  ;;  %p453_p7 = scmp.lt.s32.totalorder %s451_s27, %s444_s23 }
  0x42   : > { %p448_p12 = pneg %p447_p11  ;;  %p454_p2 = por %p453_p7, %p452_p6 }
  0x44   : > { %p455_p4 = pnand %p454_p2, %p448_p12 }
  0x46   : > { %458 = shalt.err (!%p455_p4)
}
  0x47   : > { %356 = dma.hbm_to_vmem [thread:$0]  (!%p623_p13), %s670_s7, 128, %s147_s14, %s136_s28  }
  0x48   : > { %p776_p10 = scmp.ne.s32.totalorder %s775_s29, 0 }
  0x49   : > { %s697_s5 = sand.u32 (!%p776_p10), 1, %s521_s10   ;;  %p777_p6 = scmp.ne.s32.totalorder (!%p776_p10), %s769_s20, 0 }
  0x4a   : > { %155 = sbr.rel (%p776_p10) target bundleno = 124 (0x7c), region = 28  ;;  %s700_s6 = sshll.u32 (!%p776_p10), %s697_s5, 3 }
  0x4b   : > { %s158_s8 = scalar_lea.sflag (!%p776_p10), [#allocation3], %s697_s5  ;;  %s161_s30 = scalar_lea.vmem (!%p776_p10), [#allocation2], %s700_s6 }
  0x51   : > { %504 = dma.done.wait (%p777_p6), %s158_s8, 128  }
  0x52   : > { %506 = vsyncadd (%p777_p6), %s158_s8, 4294967168  ;;  %s167_s3 = scalar_lea.sflag [#allocation6], %s697_s5  ;;  %s170_s29 = scalar_lea.vmem [#allocation5], %s700_s6 }
  0x53   : > { %508 = dma.done.wait (%p777_p6), %s167_s3, 128  }
  0x54   : > { %510 = vsyncadd (%p777_p6), %s167_s3, 4294967168  ;;  %v196_v0 = vld [vmem:[%s161_s30] sm:$0xff]  ;;  %v202_v4 = vld [vmem:[%s170_s29] sm:$0xff]  ;;  %s195_s20 = scalar_lea.vmem [#allocation7], %s700_s6  ;;  %s341_s14 = sshll.u32 %s570_s13, 7 }
  0x55   : > { %v197_v1 = vmax.f32 %v196_v0, 1e-06  ;;  %v203_v7 = vsub.f32 1.0, %v202_v4  ;;  %v215_v10 = vmul.f32 -0.5, %v202_v4  ;;  %v204_v11 = vsub.f32 0.0, %v202_v4  ;;  %s236_s7 = sshll.u32 %s195_s20, 4  ;;  %s721_s16 = scalar_lea.hbm %s765_s2, %s341_s14  ;;  %s716_s7 = int_to_ptr.vmem [resolvable:$true] %s236_s7 }
  0x56   : > { %s223_s24 = scalar_lea.sflag [#allocation4], %s697_s5  ;;  %s459_s17 = scalar_lea.vmem %s716_s7, 128 }
  0x57   : > { %v198_v2 = vmin.f32 %v197_v1, 0.999999  ;;  %v216_v15 = vadd.f32 0.75, %v215_v10  ;;  %p460_p13 = scmp.ne.s32.totalorder %s716_s7, %s459_s17  ;;  %p778_p3 = scmp.ne.s32.totalorder %s770_s21, 0 }
  0x58   : > { %s533_s13 = smov [#allocation7]  }
  0x59   : > { %v199_v3 = vsub.f32 1.0, %v198_v2  ;;  %395 = vlog2.f32 %v198_v2  ;;  %v200_v5 = vmul.f32 %v198_v2, %v198_v2  ;;  %p461_p7 = pnand %p460_p13, %p778_p3  ;;  %s463_s19 = sshll.u32 %s533_s13, 4  ;;  %s464_s19 = int_to_ptr.vmem [resolvable:$false] %s463_s19 }
  0x5a   : > { %s465_s23 = scalar_lea.vmem %s464_s19, 256  ;;  %p466_p8 = scmp.lt.s32.totalorder %s716_s7, %s464_s19 }
  0x5b   : > { %397 = vlog2.f32 %v199_v3  ;;  %v201_v6 = vmul.f32 %v199_v3, %v199_v3  ;;  %v213_v9 = vmul.f32 %v203_v7, %v200_v5  ;;  %p462_p5 = pneg %p461_p7  ;;  %p467_p9 = scmp.lt.s32.totalorder %s465_s23, %s459_s17 }
  0x5d   : > { %v212_v8 = vmul.f32 %v202_v4, %v201_v6  ;;  %p468_p0 = por %p467_p9, %p466_p8 }
  0x5f   : > { %v214_v14 = vadd.f32 %v213_v9, %v212_v8  ;;  %p469_p1 = pnand %p468_p0, %p462_p5 }
  0x61   : > { %v217_v20 = vmul.f32 %v216_v15, %v214_v14 }
  0x63   : > { %v396_v12 = vpop.eup %395 }
  0x64   : > { %v206_v13 = vmul.f32 0.6931472, %v396_v12 }
  0x65   : > { %v398_v16 = vpop.eup %397 }
  0x66   : > { %v207_v17 = vmul.f32 %v206_v13, %v204_v11  ;;  %v209_v18 = vmul.f32 0.6931472, %v398_v16 }
  0x68   : > { %v210_v19 = vmul.f32 %v209_v18, %v203_v7 }
  0x6a   : > { %v211_v21 = vsub.f32 %v207_v17, %v210_v19 }
  0x6c   : > { %v218_v22 = vmul.f32 %v217_v20, %v211_v21 }
  0x6e   : > { %221 = vst [vmem:[%s195_s20] sm:$0xff] %v218_v22 }
  0x6f   : > { %472 = shalt.err (!%p469_p1)
}
  0x70   : > { %s473_s25 = scalar_lea.hbm %s721_s16, 128  ;;  %s477_s5 = scalar_lea.hbm %s765_s2, 256 }
  0x71   : > { %p474_p11 = scmp.ne.s32.totalorder %s721_s16, %s473_s25  ;;  %p478_p4 = scmp.lt.u32.totalorder %s721_s16, %s765_s2 }
  0x72   : > { %p479_p10 = scmp.lt.u32.totalorder %s477_s5, %s473_s25  ;;  %p481_p13 = scmp.lt.u32.totalorder %s473_s25, %s721_s16 }
  0x73   : > { %p475_p12 = pnand %p474_p11, %p778_p3 }
  0x74   : > { %p480_p6 = por %p479_p10, %p478_p4 }
  0x75   : > { %p476_p2 = pneg %p475_p12 }
  0x76   : > { %p482_p7 = por %p481_p13, %p480_p6 }
  0x78   : > { %p483_p5 = pnand %p482_p7, %p476_p2 }
  0x7a   : > { %486 = shalt.err (!%p483_p5)
}
  0x7b   : > { %348 = dma.vmem_to_hbm [thread:$0]  (%p778_p3), %s716_s7, 128, %s721_s16, %s223_s24  }
  0x7c PF: > { %s248_s30 = sand.u32 1, %s517_s9   ;;  %p779_p8 = scmp.ne.s32.totalorder %s771_s22, 0 }
  0x7d   : > { %p780_p9 = scmp.ge.s32.totalorder %s529_s12, 2  ;;  %s249_s3 = scalar_lea.sflag [#allocation4], %s248_s30 }
  0x7f   : > { %p358_p0 = pnand %p780_p9, %p779_p8 }
  0x81   : > { %512 = dma.done.wait (!%p358_p0), %s249_s3, 128  }
  0x82   : > { %514 = vsyncadd (!%p358_p0), %s249_s3, 4294967168  ;;  %p18_p1 = scmp.ge.s32.totalorder %s574_s15, 4   ;;  %s781_s9 = smov %s521_s10 }
  0x83   : > { %s782_s10 = smov %s525_s11  ;;  %s783_s11 = smov %s586_s18 }
  0x84   : > { %s784_s12 = smov %s574_s15  ;;  %20 = sbr.rel (!%p18_p1) target bundleno = 7 (0x7), region = 86 }
  0x8b   :  { %254 = vsyncpa [#allocation3], 1 }
  0x8c   :  { %256 = vsyncpa [#allocation3 + $0x1], 1 }
  0x8d   :  { %257 = vsyncpa [#allocation6], 1 }
  0x8e   :  { %259 = vsyncpa [#allocation6 + $0x1], 1 }
  0x8f   :  { %260 = vsyncpa [#allocation4], 1 }
  0x90   :  { %262 = vsyncpa [#allocation4 + $0x1], 1 }

</bundles_post_ra>
